<compile_context>
chip_gen: v7x
topology: tpu7x:2x2x1
jax: 0.10.0
libtpu: 0.0.40
codegen_flags: <defaults>
</compile_context>

<pallas_src>
import jax
import jax.numpy as jnp
from jax.experimental import pallas as pl
from jax.experimental.pallas import tpu as pltpu


def _round_up(x, m):
    return ((x + m - 1) // m) * m


def _vmem_limit_bytes():
    """Generation-aware VMEM request: ~80% of physical, minus headroom."""
    cap = 128 << 20
    try:
        info = pltpu.get_tpu_info()
        cap = int(getattr(info, "vmem_capacity_bytes", cap) or cap)
    except Exception:
        pass
    # v5e/v6e (128 MiB) -> ~102 MiB, v7x (64 MiB/TC) -> ~51 MiB.
    return max(16 << 20, min(int(cap * 0.8), cap - (8 << 20)))


# ----------------------------------------------------------------------------
# Path 1: one-hot MXU gather (small vocab, VMEM-resident table)
# ----------------------------------------------------------------------------
def _onehot_kernel(ids_ref, table_ref, out_ref):
    # ids_ref:   (TB, 1)        int32 token ids for this block (VMEM)
    # table_ref: (vocab_p, dim) embedding table, VMEM-resident (Buffered(1))
    # out_ref:   (TB, dim)      gathered rows
    ids = ids_ref[...]                                     # (TB, 1)
    tb = ids.shape[0]
    vocab_p = table_ref.shape[0]
    iota = jax.lax.broadcasted_iota(jnp.int32, (tb, vocab_p), 1)
    onehot = (iota == ids).astype(table_ref.dtype)
    out_ref[...] = jnp.dot(
        onehot, table_ref[...],
        preferred_element_type=jnp.float32,
        precision=jax.lax.Precision.HIGHEST,               # exact f32 gather
    ).astype(out_ref.dtype)


def _choose_tb_onehot(n_tok, vocab_p, dim, itemsize, budget):
    table_b = vocab_p * dim * itemsize                     # single-buffered

    def fits(t):
        out_b = 2 * t * dim * itemsize                     # double-buffered out
        ids_b = 2 * t * 4                                  # double-buffered ids
        inter_b = 3 * t * vocab_p * 4                      # iota/one-hot/cast
        return table_b + out_b + ids_b + inter_b < budget

    # Prefer MXU-sized M (multiples of 256 for v6e/v7x 2x256^2 MXU).
    for cand in (1024, 768, 512, 256):
        if n_tok >= cand // 2 and fits(cand):
            return cand
    tb = min(256, _round_up(max(n_tok, 8), 8))
    while tb > 8 and not fits(tb):
        tb = _round_up(tb // 2, 8)
    return max(8, tb)


def _run_onehot(ids2d, table_p, n_pad, tb, dim, out_dtype, vmem_limit, dims_sem):
    vocab_p = table_p.shape[0]
    itemsize = jnp.dtype(table_p.dtype).itemsize
    cost = pl.CostEstimate(
        flops=2 * n_pad * vocab_p * dim,
        transcendentals=0,
        bytes_accessed=(vocab_p * dim * itemsize          # table (DMA'd once)
                        + n_pad * 4                       # ids
                        + n_pad * dim * itemsize),        # output
    )
    return pl.pallas_call(
        _onehot_kernel,
        out_shape=jax.ShapeDtypeStruct((n_pad, dim), out_dtype),
        grid_spec=pltpu.PrefetchScalarGridSpec(
            num_scalar_prefetch=0,
            grid=(n_pad // tb,),
            in_specs=[
                pl.BlockSpec((tb, 1), lambda i: (i, 0)),
                # Constant index_map -> DMA'd once; single-buffered so the
                # resident table only costs 1x VMEM.
                pl.BlockSpec((vocab_p, dim), lambda i: (0, 0),
                             pipeline_mode=pl.Buffered(1)),
            ],
            out_specs=pl.BlockSpec((tb, dim), lambda i: (i, 0)),
        ),
        compiler_params=pltpu.CompilerParams(
            dimension_semantics=dims_sem,
            vmem_limit_bytes=vmem_limit,
        ),
        cost_estimate=cost,
    )(ids2d, table_p)


# ----------------------------------------------------------------------------
# Path 2: SMEM-ids row gather from a VMEM-resident table (no MXU FLOPs)
# ----------------------------------------------------------------------------
def _vmem_gather_kernel(ids_smem, table_ref, out_ref):
    # ids_smem:  (n_pad,)    int32 token ids (SMEM, scalar-prefetched)
    # table_ref: (vocab,dim) table, VMEM-resident (Buffered(1))
    # out_ref:   (TB, dim)   gathered rows
    tb = out_ref.shape[0]
    base = pl.program_id(0) * tb

    def body(r, carry):
        tok = ids_smem[base + r]
        out_ref[pl.ds(r, 1), :] = table_ref[pl.ds(tok, 1), :]
        return carry

    jax.lax.fori_loop(0, tb, body, 0)


def _run_vmem_gather(flat_ids, table, n_pad, tb, dim, vmem_limit, dims_sem):
    vocab = table.shape[0]
    itemsize = jnp.dtype(table.dtype).itemsize
    cost = pl.CostEstimate(
        flops=0, transcendentals=0,
        bytes_accessed=vocab * dim * itemsize + n_pad * 4 + n_pad * dim * itemsize,
    )
    return pl.pallas_call(
        _vmem_gather_kernel,
        out_shape=jax.ShapeDtypeStruct((n_pad, dim), table.dtype),
        grid_spec=pltpu.PrefetchScalarGridSpec(
            num_scalar_prefetch=1,
            grid=(n_pad // tb,),
            in_specs=[
                pl.BlockSpec((vocab, dim), lambda i, ids: (0, 0),
                             pipeline_mode=pl.Buffered(1)),
            ],
            out_specs=pl.BlockSpec((tb, dim), lambda i, ids: (i, 0)),
        ),
        compiler_params=pltpu.CompilerParams(
            dimension_semantics=dims_sem,
            vmem_limit_bytes=vmem_limit,
        ),
        cost_estimate=cost,
    )(flat_ids, table)


# ----------------------------------------------------------------------------
# Path 3: table stays in HBM, double-buffered per-row DMA gather
# ----------------------------------------------------------------------------
def _dma_gather_kernel(ids_smem, table_hbm, out_ref, row_buf, sem):
    # ids_smem:  (n_pad,)      int32 ids (SMEM, scalar-prefetched)
    # table_hbm: (vocab, dim)  full table, left in HBM (memory_space=pl.ANY)
    # out_ref:   (TB, dim)     output block (VMEM)
    # row_buf:   (2, 1, dim)   VMEM double buffer; sem: DMA sems (2,)
    tb = out_ref.shape[0]
    base = pl.program_id(0) * tb

    def start_fetch(r, slot):
        tok = ids_smem[base + r]
        pltpu.make_async_copy(
            table_hbm.at[pl.ds(tok, 1), :], row_buf.at[slot], sem.at[slot]
        ).start()

    start_fetch(0, 0)

    def body(r, carry):
        slot = jax.lax.rem(r, 2)

        @pl.when(r + 1 < tb)
        def _():
            start_fetch(r + 1, 1 - slot)

        pltpu.make_async_copy(
            table_hbm.at[pl.ds(0, 1), :], row_buf.at[slot], sem.at[slot]
        ).wait()
        out_ref[pl.ds(r, 1), :] = row_buf[slot]
        return carry

    jax.lax.fori_loop(0, tb, body, 0)


def _run_dma_gather(flat_ids, table, n_pad, tb, dim, vmem_limit):
    itemsize = jnp.dtype(table.dtype).itemsize
    cost = pl.CostEstimate(
        flops=0, transcendentals=0,
        bytes_accessed=2 * n_pad * dim * itemsize + n_pad * 4,
    )
    return pl.pallas_call(
        _dma_gather_kernel,
        out_shape=jax.ShapeDtypeStruct((n_pad, dim), table.dtype),
        grid_spec=pltpu.PrefetchScalarGridSpec(
            num_scalar_prefetch=1,
            grid=(n_pad // tb,),
            in_specs=[pl.BlockSpec(memory_space=pl.ANY)],
            out_specs=pl.BlockSpec((tb, dim), lambda i, ids: (i, 0)),
            scratch_shapes=[
                pltpu.VMEM((2, 1, dim), table.dtype),
                pltpu.SemaphoreType.DMA((2,)),
            ],
        ),
        compiler_params=pltpu.CompilerParams(
            dimension_semantics=("arbitrary",),
            vmem_limit_bytes=vmem_limit,
        ),
        cost_estimate=cost,
    )(flat_ids, table)


def _choose_tb_gather(n_tok, dim, itemsize, budget, resident_bytes):
    def fits(t):
        return resident_bytes + 2 * t * dim * itemsize + 2 * t * 4 < budget

    tb = min(256, _round_up(max(n_tok, 8), 8))
    while tb > 8 and not fits(tb):
        tb = _round_up(tb // 2, 8)
    return max(8, tb)


# ----------------------------------------------------------------------------
# Dispatch wrapper (== torch.nn.Embedding(vocab, dim)(x))
# ----------------------------------------------------------------------------
def host_embedding(x, emb_table, *, impl=None):
    """Equivalent of torch.nn.Embedding(vocab, dim)(x) -> x.shape + (dim,)."""
    vocab, dim = emb_table.shape
    itemsize = jnp.dtype(emb_table.dtype).itemsize

    vmem_limit = _vmem_limit_bytes()
    budget = int(vmem_limit * 0.85)          # slack for compiler scratch

    # Clamp out-of-range ids (no runtime bounds checks in Pallas DMA/indexing).
    # TODO(synk): torch.nn.Embedding raises IndexError on OOB ids; we clamp.
    flat_ids = jnp.clip(x.reshape(-1).astype(jnp.int32), 0, vocab - 1)
    n_tok = flat_ids.shape[0]

    table_bytes = vocab * dim * itemsize
    if impl is None:
        if vocab <= 2048 and table_bytes <= budget // 2:
            impl = "onehot"
        elif table_bytes <= budget // 2:
            impl = "vmem_gather"
        else:
            impl = "dma_gather"

    if impl == "onehot":
        # Pad vocab to a multiple of 128 for lane-dense one-hot vregs; padded
        # rows are zeros and can never be selected (ids are clamped < vocab).
        vocab_p = _round_up(max(vocab, 128), 128)
        table_p = (emb_table if vocab_p == vocab
                   else jnp.pad(emb_table, ((0, vocab_p - vocab), (0, 0))))
        tb = _choose_tb_onehot(n_tok, vocab_p, dim, itemsize, budget)
        n_pad = _round_up(n_tok, tb)
        ids = flat_ids if n_pad == n_tok else jnp.pad(flat_ids, (0, n_pad - n_tok))
        ids2d = ids.reshape(n_pad, 1)
        # If the table DMA dominates traffic (tiny batch), keep it on one core
        # so megacore (v7x) does not duplicate the table DMA.
        dims_sem = ("parallel",) if n_pad >= vocab_p else ("arbitrary",)
        out_flat = _run_onehot(ids2d, table_p, n_pad, tb, dim,
                               emb_table.dtype, vmem_limit, dims_sem)
    elif impl == "vmem_gather":
        tb = _choose_tb_gather(n_tok, dim, itemsize, budget, table_bytes)
        n_pad = _round_up(n_tok, tb)
        ids = flat_ids if n_pad == n_tok else jnp.pad(flat_ids, (0, n_pad - n_tok))
        dims_sem = ("parallel",) if n_pad >= vocab else ("arbitrary",)
        out_flat = _run_vmem_gather(ids, emb_table, n_pad, tb, dim,
                                    vmem_limit, dims_sem)
    elif impl == "dma_gather":
        tb = _choose_tb_gather(n_tok, dim, itemsize, budget, 0)
        n_pad = _round_up(n_tok, tb)
        ids = flat_ids if n_pad == n_tok else jnp.pad(flat_ids, (0, n_pad - n_tok))
        out_flat = _run_dma_gather(ids, emb_table, n_pad, tb, dim, vmem_limit)
    else:
        raise ValueError(f"unknown impl {impl!r}")

    return out_flat[:n_tok].reshape(*x.shape, dim)


if __name__ == "__main__":
    # Small, deterministic "model args": vocab_size=64, dim=128.
    VOCAB, DIM = 64, 128
    BATCH, SEQ = 2, 8

    key = jax.random.PRNGKey(0)
    k_emb, k_ids = jax.random.split(key)

    emb_table = jax.random.normal(k_emb, (VOCAB, DIM), dtype=jnp.float32)
    x = jax.random.randint(k_ids, (BATCH, SEQ), 0, VOCAB, dtype=jnp.int32)

    ref = jnp.take(emb_table, x, axis=0)

    # Default dispatch (one-hot MXU path for this small vocab).
    out = jax.block_until_ready(host_embedding(x, emb_table))
    assert out.shape == (BATCH, SEQ, DIM)
    assert jnp.allclose(out, ref), "onehot path mismatch vs reference"

    # Exercise the large-vocab gather paths as well (forced at small shapes).
    for impl in ("vmem_gather", "dma_gather"):
        out_i = jax.block_until_ready(host_embedding(x, emb_table, impl=impl))
        assert jnp.allclose(out_i, ref), f"{impl} path mismatch vs reference"

    print("KERNEL_OK")
</pallas_src>

<mosaic_0001>
module attributes {stable_mosaic.version = 11 : i64} {
  func.func @_onehot_kernel(%arg0: i32, %arg1: memref<16x1xi32, #tpu.memory_space<vmem>>, %arg2: memref<128x128xf32, #tpu.memory_space<vmem>>, %arg3: memref<16x128xf32, #tpu.memory_space<vmem>>) attributes {dimension_semantics = [#tpu.dimension_semantics<arbitrary>], iteration_bounds = array<i64: 1>, scalar_prefetch = 0 : i64, scratch_operands = 0 : i64, tpu.core_type = #tpu.core_type<tc>, window_params = [{transform_indices = @transform_0, window_bounds = array<i64: 16, 1>}, {pipeline_mode = #tpu.pipeline_mode<synchronous>, transform_indices = @transform_1, window_bounds = array<i64: 128, 128>}, {transform_indices = @transform_2, window_bounds = array<i64: 16, 128>}]} {
    %c0 = arith.constant 0 : index
    %c0_0 = arith.constant 0 : index
    %0 = vector.load %arg1[%c0, %c0_0] : memref<16x1xi32, #tpu.memory_space<vmem>>, vector<16x1xi32>
    %1 = tpu.iota {dimensions = array<i32: 1>} : vector<16x128xi32>
    %2 = vector.broadcast %0 : vector<16x1xi32> to vector<16x128xi32>
    %3 = arith.cmpi eq, %1, %2 : vector<16x128xi32>
    %4 = arith.extui %3 : vector<16x128xi1> to vector<16x128xi32>
    %5 = arith.sitofp %4 : vector<16x128xi32> to vector<16x128xf32>
    %c0_1 = arith.constant 0 : index
    %c0_2 = arith.constant 0 : index
    %6 = vector.load %arg2[%c0_1, %c0_2] : memref<128x128xf32, #tpu.memory_space<vmem>>, vector<128x128xf32>
    %cst = arith.constant dense<0.000000e+00> : vector<16x128xf32>
    %7 = tpu.matmul %5, %6, %cst {dimension_numbers = #tpu.dot_dimension_numbers<[1], [0], [0], [1], [0, 0, 1, 1], [], []>, precision = #tpu.contract_precision<fp32>} : vector<16x128xf32>, vector<128x128xf32>, vector<16x128xf32> -> vector<16x128xf32>
    %c0_3 = arith.constant 0 : index
    %c0_4 = arith.constant 0 : index
    %8 = vector.load %arg3[%c0_3, %c0_4] : memref<16x128xf32, #tpu.memory_space<vmem>>, vector<16x128xf32>
    tpu.vector_store %arg3[%c0_3, %c0_4], %7 {strides = array<i32>} : memref<16x128xf32, #tpu.memory_space<vmem>>, vector<16x128xf32>,
    return
  }
  func.func @transform_0(%arg0: i32) -> (i32, i32) {
    %c0_i32 = arith.constant 0 : i32
    %c0_i32_0 = arith.constant 0 : i32
    return %arg0, %c0_i32 : i32, i32
  }
  func.func @transform_1(%arg0: i32) -> (i32, i32) {
    %c0_i32 = arith.constant 0 : i32
    %c0_i32_0 = arith.constant 0 : i32
    %c0_i32_1 = arith.constant 0 : i32
    return %c0_i32, %c0_i32_0 : i32, i32
  }
  func.func @transform_2(%arg0: i32) -> (i32, i32) {
    %c0_i32 = arith.constant 0 : i32
    %c0_i32_0 = arith.constant 0 : i32
    return %arg0, %c0_i32 : i32, i32
  }
}

</mosaic_0001>

<bundles_post_ra>
// kernel: tpu_custom_call.1
= control target key start
LH: loop header
LB: loop body
LE: loop exit
PB: predicated region body
PF: predicated region fallthrough
CT: control target
= control target key end

     0   :  { %7 = vsyncpa [#allocation3], 0  ;;  %s1709_s0 = inlined_call_operand.hbm [shape: s32[16,1], index: 0, kind: input, shape index: {}]   ;;  %s1710_s1 = inlined_call_operand.hbm [shape: f32[128,128], index: 1, kind: input, shape index: {}]   ;;  %s1711_s2 = inlined_call_operand.hbm [shape: f32[16,128], index: 2, kind: output, shape index: {}]  }
   0x1   :  { %8 = vsyncpa [#allocation6], 0 }
   0x2   :  { %9 = vsyncpa [#allocation4], 0  ;;  %s1385_s9 = smov [#allocation2]   ;;  %s1313_s13 = scalar_lea.hbm %s1709_s0, 256 }
   0x3   :  { %s15_s10 = sshll.u32 %s1385_s9, 4  ;;  %p1314_p0 = scmp.ne.s32.totalorder %s1709_s0, %s1313_s13  ;;  %s16_s10 = int_to_ptr.vmem [resolvable:$true] %s15_s10 }
   0x4   :  { %p1317_p1 = scmp.lt.u32.totalorder %s1313_s13, %s1709_s0 }
   0x6   :  { %p1319_p2 = pnand %p1317_p1, %p1314_p0 }
   0x8   :  { %1322 = shalt.err (!%p1319_p2)
}
   0x9   :  { %s1323_s18 = scalar_lea.vmem %s16_s10, 256  ;;  %p1328_p4 = scmp.lt.s32.totalorder %s16_s10, %s16_s10 }
   0xa   :  { %p1324_p3 = scmp.ne.s32.totalorder %s16_s10, %s1323_s18  ;;  %p1329_p5 = scmp.lt.s32.totalorder %s1323_s18, %s1323_s18 }
   0xc   :  { %p1330_p6 = por %p1329_p5, %p1328_p4 }
   0xe   :  { %p1331_p7 = pnand %p1330_p6, %p1324_p3 }
  0x10   :  { %1334 = shalt.err (!%p1331_p7)
}
  0x11   :  { %s1386_s19 = smov 128   ;;  %s1387_s20 = smov 8  }
  0x12   :  { %21 = dma.hbm_to_vmem [thread:$0]  %s1709_s0, 256, %s16_s10, [#allocation3], %s1386_s19, %s1386_s19, %s1387_s20  }
  0x13   :  { %s1388_s23 = smov [#allocation5]   ;;  %s1335_s27 = scalar_lea.hbm %s1710_s1, 2048 }
  0x14   :  { %s27_s24 = sshll.u32 %s1388_s23, 4  ;;  %p1336_p8 = scmp.ne.s32.totalorder %s1710_s1, %s1335_s27  ;;  %s28_s24 = int_to_ptr.vmem [resolvable:$true] %s27_s24 }
  0x15   :  { %p1339_p9 = scmp.lt.u32.totalorder %s1335_s27, %s1710_s1 }
  0x17   :  { %p1341_p10 = pnand %p1339_p9, %p1336_p8 }
  0x19   :  { %1344 = shalt.err (!%p1341_p10)
}
  0x1a   :  { %s1345_s4 = scalar_lea.vmem %s28_s24, 2048  ;;  %p1350_p12 = scmp.lt.s32.totalorder %s28_s24, %s28_s24 }
  0x1b   :  { %p1346_p11 = scmp.ne.s32.totalorder %s28_s24, %s1345_s4  ;;  %p1351_p13 = scmp.lt.s32.totalorder %s1345_s4, %s1345_s4 }
  0x1d   :  { %p1352_p0 = por %p1351_p13, %p1350_p12 }
  0x1f   :  { %p1353_p1 = pnand %p1352_p0, %p1346_p11 }
  0x21   :  { %1356 = shalt.err (!%p1353_p1)
}
  0x22   :  { %33 = dma.hbm_to_vmem [thread:$0]  %s1710_s1, 2048, %s28_s24, [#allocation6], %s1386_s19, %s1386_s19, %s1387_s20  }
  0x23   :  { %1379 = dma.done.wait [#allocation3], 256  }
  0x24   :  { %1380 = vsyncadd [#allocation3], 4294967040 }
  0x25   :  { %1381 = dma.done.wait [#allocation6], 2048  }
  0x26   :  { %1382 = vsyncadd [#allocation6], 4294965248  ;;  %v1389_v0 = vmov 0   ;;  %v40_v1 = vld [vmem:[#allocation2] sm:$0xff]  ;;  %v56_v2 = vld [vmem:[#allocation5] sm:$0xff]  ;;  %s1392_s1 = smov [#allocation7]  }
  0x27   :  { %1312 = vset.pattern.permute.xlu0 %v1389_v0  ;;  %v57_v3 = vld [vmem:[#allocation5 + $0x8] sm:$0xff]  ;;  %v73_v4 = vand.u32 4294901760, %v56_v2  ;;  %v58_v5 = vld [vmem:[#allocation5 + $0x10] sm:$0xff]  ;;  %v59_v6 = vld [vmem:[#allocation5 + $0x18] sm:$0xff]  ;;  %s763_s6 = sshll.u32 %s1392_s1, 4  ;;  %s764_s6 = int_to_ptr.vmem [resolvable:$true] %s763_s6 }
  0x28   :  { %45 = vperm.xlu0 %1312, %v40_v1   ;;  %v41_v7 = vld [vmem:[#allocation2 + $0x8] sm:$0xff]  ;;  %v76_v8 = vand.u32 4294901760, %v57_v3  ;;  %v79_v9 = vand.u32 4294901760, %v58_v5  ;;  %v82_v10 = vand.u32 4294901760, %v59_v6  ;;  %v60_v11 = vld [vmem:[#allocation5 + $0x20] sm:$0xff]  ;;  %v61_v12 = vld [vmem:[#allocation5 + $0x28] sm:$0xff]  ;;  %p1362_p3 = scmp.lt.s32.totalorder %s764_s6, %s764_s6 }
  0x29   :  { %v85_v15 = vand.u32 4294901760, %v60_v11  ;;  %v88_v16 = vand.u32 4294901760, %v61_v12  ;;  %v62_v17 = vld [vmem:[#allocation5 + $0x30] sm:$0xff]  ;;  %v63_v18 = vld [vmem:[#allocation5 + $0x38] sm:$0xff]  ;;  %v64_v22 = vld [vmem:[#allocation5 + $0x40] sm:$0xff]  ;;  %v1486_v45 = vsub.f32 %v56_v2, %v73_v4  ;;  %s1357_s7 = scalar_lea.vmem %s764_s6, 256 }
  0x2a   :  { %v1438_v13 = vpack.c.bf16 %v76_v8, %v73_v4  ;;  %v1440_v14 = vpack.c.bf16 %v82_v10, %v79_v9  ;;  %v91_v20 = vand.u32 4294901760, %v62_v17  ;;  %v94_v21 = vand.u32 4294901760, %v63_v18  ;;  %v65_v23 = vld [vmem:[#allocation5 + $0x48] sm:$0xff]  ;;  %v1456_v28 = vld [vmem:[#allocation5 + $0x50] sm:$0xff]  ;;  %v1464_v32 = vld [vmem:[#allocation5 + $0x58] sm:$0xff]  ;;  %p1358_p2 = scmp.ne.s32.totalorder %s764_s6, %s1357_s7  ;;  %p1363_p4 = scmp.lt.s32.totalorder %s1357_s7, %s1357_s7 }
  0x2b   :  { %v1448_v19 = vpack.c.bf16 %v88_v16, %v85_v15  ;;  %v1450_v24 = vsub.f32 %v58_v5, %v79_v9  ;;  %v1452_v25 = vsub.f32 %v59_v6, %v82_v10  ;;  %v97_v26 = vand.u32 4294901760, %v64_v22  ;;  %v1480_v41 = vld [vmem:[#allocation5 + $0x60] sm:$0xff]  ;;  %v1484_v44 = vld [vmem:[#allocation5 + $0x68] sm:$0xff]  ;;  %v1508_v58 = vld [vmem:[#allocation5 + $0x70] sm:$0xff] }
  0x2c   :  { %48 = vperm.xlu0 %1312, %v41_v7   ;;  %1199 = vmatprep.subr.bf16.mxu0 %v1438_v13  ;;  %v100_v27 = vand.u32 4294901760, %v65_v23  ;;  %v1462_v31 = vpack.c.bf16 %v94_v21, %v91_v20  ;;  %v103_v36 = vand.u32 4294901760, %v1456_v28  ;;  %v1471_v37 = vsub.f32 %v60_v11, %v85_v15  ;;  %v71_v61 = vld [vmem:[#allocation5 + $0x78] sm:$0xff]  ;;  %p1364_p5 = por %p1363_p4, %p1362_p3 }
  0x2d   :  { %1103 = vmatprep.subr.bf16.mxu1 %v1438_v13  ;;  %1201 = vmatpush3.bf16.msra.mxu0 %v1438_v13  ;;  %v190_v29 = vand.u32 4294901760, %v1450_v24  ;;  %v197_v30 = vand.u32 4294901760, %v1452_v25  ;;  %v1473_v38 = vsub.f32 %v61_v12, %v88_v16  ;;  %v106_v40 = vand.u32 4294901760, %v1464_v32 }
  0x2e   :  { %1105 = vmatpush3.bf16.msra.mxu1 %v1438_v13  ;;  %1203 = vmatprep.subr.bf16.mxu0 %v1440_v14  ;;  %v1477_v39 = vpack.c.bf16 %v100_v27, %v97_v26  ;;  %v1488_v46 = vsub.f32 %v57_v3, %v76_v8  ;;  %v204_v47 = vand.u32 4294901760, %v1471_v37  ;;  %v1494_v50 = vsub.f32 %v62_v17, %v91_v20  ;;  %p1365_p6 = pnand %p1364_p5, %p1358_p2 }
  0x2f   :  { %1107 = vmatprep.subr.bf16.mxu1 %v1440_v14  ;;  %v1466_v33 = vpack.c.bf16 %v197_v30, %v190_v29  ;;  %v191_v34 = vsub.f32 %v1450_v24, %v190_v29  ;;  %v198_v35 = vsub.f32 %v1452_v25, %v197_v30  ;;  %v211_v48 = vand.u32 4294901760, %v1473_v38 }
  0x30   :  { %v1496_v51 = vsub.f32 %v63_v18, %v94_v21  ;;  %v109_v52 = vand.u32 4294901760, %v1480_v41  ;;  %v205_v54 = vsub.f32 %v1471_v37, %v204_v47  ;;  %v1505_v56 = vpack.c.bf16 %v106_v40, %v103_v36 }
  0x31   :  { %1205 = vmatpush3.bf16.msra.mxu0 %v1440_v14  ;;  %v192_v42 = vand.u32 4294901760, %v191_v34  ;;  %v199_v43 = vand.u32 4294901760, %v198_v35  ;;  %v1499_v53 = vpack.c.bf16 %v211_v48, %v204_v47  ;;  %v212_v55 = vsub.f32 %v1473_v38, %v211_v48 }
  0x32   :  { %1109 = vmatpush3.bf16.msra.mxu1 %v1440_v14  ;;  %1207 = vmatprep.subr.bf16.mxu0 %v1448_v19  ;;  %v112_v57 = vand.u32 4294901760, %v1484_v44  ;;  %v218_v59 = vand.u32 4294901760, %v1494_v50  ;;  %v225_v60 = vand.u32 4294901760, %v1496_v51  ;;  %v176_v62 = vand.u32 4294901760, %v1486_v45 }
  0x33   :  { %1111 = vmatprep.subr.bf16.mxu1 %v1448_v19  ;;  %v1492_v49 = vpack.c.bf16 %v199_v43, %v192_v42  ;;  %v183_v63 = vand.u32 4294901760, %v1488_v46  ;;  %v206_v0 = vand.u32 4294901760, %v205_v54  ;;  %v213_v1 = vand.u32 4294901760, %v212_v55 }
  0x34   :  { %v1516_v2 = vpack.c.bf16 %v225_v60, %v218_v59  ;;  %v219_v3 = vsub.f32 %v1494_v50, %v218_v59  ;;  %v226_v4 = vsub.f32 %v1496_v51, %v225_v60  ;;  %v1520_v5 = vsub.f32 %v64_v22, %v97_v26 }
  0x35   :  { %1209 = vmatpush3.bf16.msra.mxu0 %v1448_v19  ;;  %v115_v6 = vand.u32 4294901760, %v1508_v58  ;;  %v1523_v7 = vpack.c.bf16 %v213_v1, %v206_v0  ;;  %v1525_v8 = vsub.f32 %v65_v23, %v100_v27  ;;  %v118_v9 = vand.u32 4294901760, %v71_v61 }
  0x36   :  { %1113 = vmatpush3.bf16.msra.mxu1 %v1448_v19  ;;  %1211 = vmatprep.subr.bf16.mxu0 %v1462_v31  ;;  %v220_v10 = vand.u32 4294901760, %v219_v3  ;;  %v227_v11 = vand.u32 4294901760, %v226_v4  ;;  %v232_v12 = vand.u32 4294901760, %v1520_v5  ;;  %v1532_v15 = vpack.c.bf16 %v112_v57, %v109_v52 }
  0x37   :  { %1115 = vmatprep.subr.bf16.mxu1 %v1462_v31  ;;  %v177_v16 = vsub.f32 %v1486_v45, %v176_v62  ;;  %v184_v17 = vsub.f32 %v1488_v46, %v183_v63  ;;  %v239_v18 = vand.u32 4294901760, %v1525_v8  ;;  %v245_v22 = vsub.f32 %v1456_v28, %v103_v36 }
  0x38   :  { %v1537_v20 = vpack.c.bf16 %v227_v11, %v220_v10  ;;  %v233_v21 = vsub.f32 %v1520_v5, %v232_v12  ;;  %v252_v23 = vsub.f32 %v1464_v32, %v106_v40  ;;  %v1549_v35 = vpack.c.bf16 %v118_v9, %v115_v6 }
  0x39   :  { %1213 = vmatpush3.bf16.msra.mxu0 %v1462_v31  ;;  %v1542_v26 = vpack.c.bf16 %v239_v18, %v232_v12  ;;  %v240_v27 = vsub.f32 %v1525_v8, %v239_v18  ;;  %v246_v30 = vand.u32 4294901760, %v245_v22  ;;  %v178_v28 = vand.u32 4294901760, %v177_v16 }
  0x3a   :  { %1117 = vmatpush3.bf16.msra.mxu1 %v1462_v31  ;;  %1215 = vmatprep.subr.bf16.mxu0 %v1477_v39  ;;  %v234_v29 = vand.u32 4294901760, %v233_v21  ;;  %v253_v34 = vand.u32 4294901760, %v252_v23  ;;  %v185_v36 = vand.u32 4294901760, %v184_v17  ;;  %v259_v47 = vsub.f32 %v1480_v41, %v109_v52 }
  0x3b   :  { %1119 = vmatprep.subr.bf16.mxu1 %v1477_v39  ;;  %v241_v32 = vand.u32 4294901760, %v240_v27  ;;  %v247_v42 = vsub.f32 %v245_v22, %v246_v30  ;;  %v266_v54 = vsub.f32 %v1484_v44, %v112_v57  ;;  %v1230_v0 = vpack.c.bf16 %v183_v63, %v176_v62 }
  0x3c   :  { %v1551_v40 = vpack.c.bf16 %v253_v34, %v246_v30  ;;  %v254_v43 = vsub.f32 %v252_v23, %v253_v34  ;;  %v260_v60 = vand.u32 4294901760, %v259_v47  ;;  %v1134_v1 = vpack.c.bf16 %v185_v36, %v178_v28 }
  0x3d   :  { %1217 = vmatpush3.bf16.msra.mxu0 %v1477_v39  ;;  %v1554_v48 = vpack.c.bf16 %v241_v32, %v234_v29  ;;  %v248_v55 = vand.u32 4294901760, %v247_v42  ;;  %v267_v3 = vand.u32 4294901760, %v266_v54  ;;  %v273_v52 = vsub.f32 %v1508_v58, %v115_v6 }
  0x3e   :  { %1121 = vmatpush3.bf16.msra.mxu1 %v1477_v39  ;;  %1219 = vmatprep.subr.bf16.mxu0 %v1505_v56  ;;  %v255_v59 = vand.u32 4294901760, %v254_v43  ;;  %v261_v41 = vsub.f32 %v259_v47, %v260_v60  ;;  %v280_v44 = vsub.f32 %v71_v61, %v118_v9  ;;  %v1574_v9 = vpack.c.bf16 %v1488_v46, %v1486_v45 }
  0x3f   :  { %1123 = vmatprep.subr.bf16.mxu1 %v1505_v56  ;;  %v1564_v57 = vpack.c.bf16 %v267_v3, %v260_v60  ;;  %v268_v10 = vsub.f32 %v266_v54, %v267_v3  ;;  %v274_v12 = vand.u32 4294901760, %v273_v52  ;;  %v1578_v27 = vpack.c.bf16 %v1452_v25, %v1450_v24 }
  0x40   :  { %v1561_v4 = vpack.c.bf16 %v255_v59, %v248_v55  ;;  %v262_v11 = vand.u32 4294901760, %v261_v41  ;;  %v281_v16 = vand.u32 4294901760, %v280_v44  ;;  %v1582_v29 = vpack.c.bf16 %v1473_v38, %v1471_v37 }
  0x41   :  { %1221 = vmatpush3.bf16.msra.mxu0 %v1505_v56  ;;  %v269_v62 = vand.u32 4294901760, %v268_v10  ;;  %v275_v17 = vsub.f32 %v273_v52, %v274_v12  ;;  %v1586_v30 = vpack.c.bf16 %v1496_v51, %v1494_v50  ;;  %v1590_v34 = vpack.c.bf16 %v1525_v8, %v1520_v5 }
  0x42   :  { %1125 = vmatpush3.bf16.msra.mxu1 %v1505_v56  ;;  %1223 = vmatprep.subr.bf16.mxu0 %v1532_v15  ;;  %v1568_v63 = vpack.c.bf16 %v281_v16, %v274_v12  ;;  %v282_v18 = vsub.f32 %v280_v44, %v281_v16  ;;  %v1592_v28 = vpack.c.bf16 %v252_v23, %v245_v22  ;;  %v42_v24 = vlaneseq }
  0x43   :  { %1127 = vmatprep.subr.bf16.mxu1 %v1532_v15  ;;  %v1158_v21 = vpack.c.bf16 %v269_v62, %v262_v11  ;;  %v276_v58 = vand.u32 4294901760, %v275_v17  ;;  %v1594_v45 = vpack.c.bf16 %v266_v54, %v259_v47  ;;  %v1596_v46 = vpack.c.bf16 %v280_v44, %v273_v52 }
  0x44   :  { %v283_v61 = vand.u32 4294901760, %v282_v18  ;;  %v1598_v25 = vand.u32 127, %v42_v24  ;;  %v1390_v37 = vmov 0.0   ;;  %v1391_v47 = vmov 1.0  }
  0x45   :  { %1225 = vmatpush3.bf16.msra.mxu0 %v1532_v15 }
  0x46   :  { %1129 = vmatpush3.bf16.msra.mxu1 %v1532_v15  ;;  %1227 = vmatprep.subr.bf16.mxu0 %v1549_v35  ;;  %v1570_v6 = vpack.c.bf16 %v283_v61, %v276_v58 }
  0x47   :  { %1131 = vmatprep.subr.bf16.mxu1 %v1549_v35 }
  0x49   :  { %1229 = vmatpush3.bf16.msra.mxu0 %v1549_v35 }
  0x4a   :  { %1133 = vmatpush3.bf16.msra.mxu1 %v1549_v35  ;;  %1231 = vmatprep.subr.bf16.mxu0 %v1230_v0 }
  0x4b   :  { %1135 = vmatprep.subr.bf16.mxu1 %v1134_v1 }
  0xa7   :  { %v46_v36 = vpop.permute.xlu0 %45 }
  0xa8   :  { %vm50_vm0 = vcmp.eq.s32.totalorder %v1598_v25, %v46_v36 }
  0xa9   :  { %v776_v38 = vsel %vm50_vm0, 1.0, %v1390_v37 }
  0xaa   :  { %v154_v50 = vsub.f32 %v776_v38, %v776_v38 }
  0xab   :  { %v1603_v51 = vpop.permute.xlu0 %48 }
  0xac   :  { %vm51_vm1 = vcmp.eq.s32.totalorder %v1598_v25, %v1603_v51  ;;  %v155_v5 = vand.u32 4294901760, %v154_v50 }
  0xad   :  { %v777_v8 = vsel %vm51_vm1, 1.0, %v1390_v37 }
  0xae   :  { %v1610_v22 = vsub.f32 %v777_v8, %v777_v8  ;;  %1029 = vmatprep.mubr.f32.mxu0 %v155_v5  ;;  %v156_v23 = vsub.f32 %v154_v50, %v155_v5 }
  0xb0   :  { %v157_v32 = vand.u32 4294901760, %v156_v23  ;;  %v165_v42 = vand.u32 4294901760, %v1610_v22 }
  0xb2   :  { %924 = vmatprep.mubr.f32.mxu1 %v157_v32  ;;  %1030 = vmatmul.mubr.f32.vlgmr.msra.gmra.mrb[0].mxu0 %v165_v42  ;;  %v166_v43 = vsub.f32 %v1610_v22, %v165_v42 }
  0xb3   :  { %1233 = vmatpush3.bf16.msra.mxu0 %v1230_v0  ;;  %1064 = vmatprep.mubr.msk.f32.mxu0 %vm50_vm0, %v1391_v47 }
  0xb4   :  { %1235 = vmatprep.subr.bf16.mxu0 %v1466_v33  ;;  %v167_v54 = vand.u32 4294901760, %v166_v43 }
  0xb6   :  { %925 = vmatmul.mubr.f32.vlgmr.msra.gmra.mrb[0].mxu1 %v167_v54 }
  0xb7   :  { %1137 = vmatpush3.bf16.msra.mxu1 %v1134_v1  ;;  %1237 = vmatpush3.bf16.msra.mxu0 %v1466_v33 }
  0xb8   :  { %959 = vmatprep.mubr.msk.f32.mxu1 %vm50_vm0, %v1391_v47  ;;  %1139 = vmatprep.subr.bf16.mxu1 %v1492_v49 }
  0xb9   :  { %1239 = vmatprep.subr.bf16.mxu0 %v1499_v53 }
  0xbb   :  { %1141 = vmatpush3.bf16.msra.mxu1 %v1492_v49  ;;  %1241 = vmatpush3.bf16.msra.mxu0 %v1499_v53 }
  0xbc   :  { %1143 = vmatprep.subr.bf16.mxu1 %v1523_v7  ;;  %1243 = vmatprep.subr.bf16.mxu0 %v1516_v2 }
  0xbf   :  { %1145 = vmatpush3.bf16.msra.mxu1 %v1523_v7  ;;  %1245 = vmatpush3.bf16.msra.mxu0 %v1516_v2 }
  0xc0   :  { %1147 = vmatprep.subr.bf16.mxu1 %v1537_v20  ;;  %1247 = vmatprep.subr.bf16.mxu0 %v1542_v26 }
  0xc3   :  { %1149 = vmatpush3.bf16.msra.mxu1 %v1537_v20  ;;  %1249 = vmatpush3.bf16.msra.mxu0 %v1542_v26 }
  0xc4   :  { %1151 = vmatprep.subr.bf16.mxu1 %v1554_v48  ;;  %1251 = vmatprep.subr.bf16.mxu0 %v1551_v40 }
  0xc7   :  { %1153 = vmatpush3.bf16.msra.mxu1 %v1554_v48  ;;  %1253 = vmatpush3.bf16.msra.mxu0 %v1551_v40 }
  0xc8   :  { %1155 = vmatprep.subr.bf16.mxu1 %v1561_v4  ;;  %1255 = vmatprep.subr.bf16.mxu0 %v1564_v57 }
  0xcb   :  { %1157 = vmatpush3.bf16.msra.mxu1 %v1561_v4  ;;  %1257 = vmatpush3.bf16.msra.mxu0 %v1564_v57 }
  0xcc   :  { %1159 = vmatprep.subr.bf16.mxu1 %v1158_v21  ;;  %1259 = vmatprep.subr.bf16.mxu0 %v1568_v63 }
  0xcf   :  { %1161 = vmatpush3.bf16.msra.mxu1 %v1158_v21  ;;  %1261 = vmatpush3.bf16.msra.mxu0 %v1568_v63 }
  0xd0   :  { %1163 = vmatprep.subr.bf16.mxu1 %v1570_v6  ;;  %1263 = vmatprep.subr.bf16.mxu0 %v1438_v13 }
  0xd2   :  { %1065 = vmatmul.mubr.msk.f32.vlgmr.msra.gmra.mrb[0].mxu0 %vm51_vm1, %v1391_v47 }
  0xd3   :  { %1165 = vmatpush3.bf16.msra.mxu1 %v1570_v6  ;;  %1265 = vmatpush3.bf16.msra.mxu0 %v1438_v13 }
  0xd4   :  { %1099 = vmatprep.mubr.msk.f32.mxu0 %vm50_vm0, %v1391_v47  ;;  %1167 = vmatprep.subr.bf16.mxu1 %v1574_v9 }
  0xd5   :  { %1267 = vmatprep.subr.bf16.mxu0 %v1440_v14 }
  0xd6   :  { %960 = vmatmul.mubr.msk.f32.vlgmr.msra.gmra.mrb[0].mxu1 %vm51_vm1, %v1391_v47 }
  0xd7   :  { %1169 = vmatpush3.bf16.msra.mxu1 %v1574_v9  ;;  %994 = vmatprep.mubr.f32.mxu1 %v154_v50 }
  0xd8   :  { %1269 = vmatpush3.bf16.msra.mxu0 %v1440_v14  ;;  %1171 = vmatprep.subr.bf16.mxu1 %v1578_v27 }
  0xd9   :  { %1271 = vmatprep.subr.bf16.mxu0 %v1448_v19 }
  0xdb   :  { %1173 = vmatpush3.bf16.msra.mxu1 %v1578_v27 }
  0xdc   :  { %1273 = vmatpush3.bf16.msra.mxu0 %v1448_v19  ;;  %1175 = vmatprep.subr.bf16.mxu1 %v1582_v29 }
  0xdd   :  { %1275 = vmatprep.subr.bf16.mxu0 %v1462_v31 }
  0xdf   :  { %1177 = vmatpush3.bf16.msra.mxu1 %v1582_v29 }
  0xe0   :  { %1277 = vmatpush3.bf16.msra.mxu0 %v1462_v31  ;;  %1179 = vmatprep.subr.bf16.mxu1 %v1586_v30 }
  0xe1   :  { %1279 = vmatprep.subr.bf16.mxu0 %v1477_v39 }
  0xe3   :  { %1181 = vmatpush3.bf16.msra.mxu1 %v1586_v30 }
  0xe4   :  { %1281 = vmatpush3.bf16.msra.mxu0 %v1477_v39  ;;  %1183 = vmatprep.subr.bf16.mxu1 %v1590_v34 }
  0xe5   :  { %1283 = vmatprep.subr.bf16.mxu0 %v1505_v56 }
  0xe7   :  { %1185 = vmatpush3.bf16.msra.mxu1 %v1590_v34 }
  0xe8   :  { %1285 = vmatpush3.bf16.msra.mxu0 %v1505_v56  ;;  %1187 = vmatprep.subr.bf16.mxu1 %v1592_v28 }
  0xe9   :  { %1287 = vmatprep.subr.bf16.mxu0 %v1532_v15 }
  0xeb   :  { %1189 = vmatpush3.bf16.msra.mxu1 %v1592_v28 }
  0xec   :  { %1289 = vmatpush3.bf16.msra.mxu0 %v1532_v15  ;;  %1191 = vmatprep.subr.bf16.mxu1 %v1594_v45 }
  0xed   :  { %1291 = vmatprep.subr.bf16.mxu0 %v1549_v35 }
  0xef   :  { %1193 = vmatpush3.bf16.msra.mxu1 %v1594_v45 }
  0xf0   :  { %1293 = vmatpush3.bf16.msra.mxu0 %v1549_v35  ;;  %1195 = vmatprep.subr.bf16.mxu1 %v1596_v46 }
  0xf3   :  { %1100 = vmatmul.mubr.msk.f32.vlgmr.msra.gmra.mrb[0].mxu0 %vm51_vm1, %v1391_v47  ;;  %1197 = vmatpush3.bf16.msra.mxu1 %v1596_v46 }
  0xf6   :  { %995 = vmatmul.mubr.f32.vlgmr.msra.gmra.mrb[0].mxu1 %v1610_v22 }
 0x1c6   :  { %v1101_v13 = vpop.f32.mrb[0].mxu0 }
 0x1c7   :  { %v746_v14 = vpop.f32.mrb[1].mxu0 }
 0x1c9   :  { %v996_v19 = vpop.f32.mrb[0].mxu1 }
 0x1ca   :  { %v1294_v31 = vadd.f32 %v1101_v13, %v996_v19  ;;  %v430_v33 = vpop.f32.mrb[1].mxu1 }
 0x1cb   :  { %v1295_v39 = vadd.f32 %v746_v14, %v430_v33 }
 0x1cc   :  { %757 = vst [vmem:[#allocation7 + $0x8] sm:$0xff] %v1294_v31 }
 0x1cd   :  { %756 = vst [vmem:[#allocation7] sm:$0xff] %v1295_v39 }
 0x1ce   :  { %1368 = shalt.err (!%p1365_p6)
}
 0x1cf   :  { %s1369_s10 = scalar_lea.hbm %s1711_s2, 256 }
 0x1d0   :  { %p1370_p7 = scmp.ne.s32.totalorder %s1711_s2, %s1369_s10  ;;  %p1373_p8 = scmp.lt.u32.totalorder %s1369_s10, %s1711_s2 }
 0x1d2   :  { %p1375_p9 = pnand %p1373_p8, %p1370_p7 }
 0x1d4   :  { %1378 = shalt.err (!%p1375_p9)
}
 0x1d5   :  { %769 = dma.vmem_to_hbm [thread:$0]  %s764_s6, 256, %s1711_s2, [#allocation4], %s1386_s19, %s1386_s19, %s1387_s20  }
 0x1d6   :  { %1383 = dma.done.wait [#allocation4], 256  }
 0x1d7   :  { %1384 = vsyncadd [#allocation4], 4294967040 }
 0x1d8   :  { %773 = vsyncpa [#allocation3], 1 }
 0x1d9   :  { %774 = vsyncpa [#allocation6], 1 }
 0x1da   :  { %775 = vsyncpa [#allocation4], 1 }

</bundles_post_ra>
